<compile_context>
chip_gen: v7x
topology: tpu7x:2x2x1
jax: 0.10.0
libtpu: 0.0.40
codegen_flags: <defaults>
</compile_context>

<pallas_src>
import numpy as np
import jax
import jax.numpy as jnp
from jax.experimental import pallas as pl
from jax.experimental.pallas import tpu as pltpu


def _round_up(x, m):
    return ((x + m - 1) // m) * m


def _vmem_capacity_bytes():
    """Physical VMEM per TensorCore; conservative fallback if query fails."""
    try:
        info = pltpu.get_tpu_info()
        cap = getattr(info, "vmem_capacity_bytes", None)
        if cap:
            return int(cap)
    except Exception:
        pass
    return 64 << 20  # v7x per-TC VMEM (smallest of v5e/v6e/v7x) -> safe everywhere


# ---------------------------------------------------------------------------
# Kernels
# ---------------------------------------------------------------------------
def _brucenet_kernel_single(x_ref, w_ref, out_ref):
    """Whole contraction in one MXU matmul (weight resident in VMEM).

    x_ref   : VMEM (bt, Mp)  flattened image slab (lane-dense contraction)
    w_ref   : VMEM (Mp, Np)  fused conv+pool weights (grid-invariant, Buffered(1))
    out_ref : VMEM (bt, Np)  pooled statistics (128-lane unmasked store)
    """
    out_ref[...] = jnp.dot(x_ref[...], w_ref[...],
                           preferred_element_type=jnp.float32
                           ).astype(out_ref.dtype)


def _brucenet_kernel_tiled(x_ref, w_ref, out_ref, acc_ref):
    """Contraction-dim tiled matmul with f32 VMEM accumulator (large images)."""
    k = pl.program_id(1)

    @pl.when(k == 0)
    def _():
        acc_ref[...] = jnp.zeros_like(acc_ref)

    acc_ref[...] += jnp.dot(x_ref[...], w_ref[...],
                            preferred_element_type=jnp.float32)

    @pl.when(k == pl.num_programs(1) - 1)
    def _():
        out_ref[...] = acc_ref[...].astype(out_ref.dtype)


# ---------------------------------------------------------------------------
# Fused weight construction (conv bank + uniform pooling folded into one map)
# ---------------------------------------------------------------------------
def make_brucenet_fused_weights(filters, H, W, pooling_region_size):
    """W_fused of shape (H*W, K*nR*nC): stats = x.reshape(H*W) @ W_fused.

    Built over interior (unpadded) pixel coordinates -- zero-padded pixels
    contribute nothing, so the linear map is identical on the interior.
    Build once per (filters, H, W, p) and reuse across forward calls.
    """
    K, KH, KW = filters.shape
    assert KH % 2 == 1 and KW % 2 == 1, "filter bank must have odd spatial taps"
    p = pooling_region_size
    nR, nC = H // p, W // p
    pad_h, pad_w = (KH - 1) // 2, (KW - 1) // 2
    Hp, Wp = H + 2 * pad_h, W + 2 * pad_w
    f = filters.astype(jnp.float32)
    # Block-average pooling selectors (1/p each; product gives the 1/p^2 mean).
    Rpool = (jnp.arange(H)[None, :] // p ==
             jnp.arange(nR)[:, None]).astype(jnp.float32) / p            # (nR, H)
    Cpool = (jnp.arange(W)[None, :] // p ==
             jnp.arange(nC)[:, None]).astype(jnp.float32) / p            # (nC, W)
    # Shifted copies aligned to padded coords: Rshift[r,i,yy] = Rpool[r, yy-i].
    Rshift = jnp.stack([jnp.pad(Rpool, ((0, 0), (i, Hp - H - i)))
                        for i in range(KH)], axis=1)                     # (nR,KH,Hp)
    Cshift = jnp.stack([jnp.pad(Cpool, ((0, 0), (j, Wp - W - j)))
                        for j in range(KW)], axis=1)                     # (nC,KW,Wp)
    # M[k,r,c,yy,xx] = sum_{i,j} filt[k,i,j] * Rpool[r,yy-i] * Cpool[c,xx-j]
    M = jnp.einsum('kij,riy,cjx->krcyx', f, Rshift, Cshift)              # (K,nR,nC,Hp,Wp)
    # Keep only interior pixels (the padded border multiplies zeros anyway).
    M = M[..., pad_h:pad_h + H, pad_w:pad_w + W]                         # (K,nR,nC,H,W)
    return M.reshape(K * nR * nC, H * W).T                               # (H*W, S)


# ---------------------------------------------------------------------------
# Forward
# ---------------------------------------------------------------------------
def brucenet_forward(x, filters, pooling_region_size, *, fused_weights=None,
                     batch_tile=None, k_tile=None, compute_dtype=jnp.float32):
    """x: (B, 1, H, W) NCHW.  Returns (B, num_stats) (or (num_stats,) if B==1)."""
    B, C, H, W = x.shape
    assert C == 1, "BruceNet operates on single-channel (grayscale) frames"
    K, KH, KW = filters.shape
    assert KH % 2 == 1 and KW % 2 == 1, "filter bank must have odd spatial taps"
    p = pooling_region_size
    assert H % p == 0 and W % p == 0
    nR, nC = H // p, W // p
    num_stats = K * nR * nC

    # ---- fused weights (build once per static filter bank; or pass in) ----
    if fused_weights is None:
        fused_weights = make_brucenet_fused_weights(filters, H, W, p)
    Mdim, S = fused_weights.shape
    assert Mdim == H * W and S == num_stats

    Np = _round_up(num_stats, 128)     # output lanes -> unmasked 128-wide stores

    # ---- batch tiling: multiples of 8 sublanes, no all-zero grid steps ----
    if batch_tile is not None:
        bt = max(8, _round_up(batch_tile, 8))
    elif B <= 128:
        bt = max(8, _round_up(B, 8))
    else:
        bt = 128
    nblocks = pl.cdiv(B, bt)
    Bp = bt * nblocks

    # ---- contraction tiling sized against the VMEM budget ----
    vmem_budget = min((_vmem_capacity_bytes() * 3) // 4, 100 << 20)
    in_item = jnp.dtype(compute_dtype).itemsize
    Mp0 = _round_up(Mdim, 128)
    # single-shot path: resident weight (1 buffer) + double-buffered x + out
    bytes_single = in_item * (Mp0 * Np + 2 * bt * Mp0) + 4 * (2 * bt * Np)
    if k_tile is not None:
        tk = max(128, _round_up(k_tile, 128))
        nk = pl.cdiv(Mp0, tk)
    elif bytes_single <= vmem_budget:
        tk, nk = Mp0, 1
    else:
        fixed = 4 * (2 * bt * Np + bt * Np)          # out double-buffer + accumulator
        per_tk = in_item * (2 * Np + 2 * bt)         # weight + x double-buffers per row
        tk = max(128, ((max(vmem_budget - fixed, 0) // max(per_tk, 1)) // 128) * 128)
        nk = pl.cdiv(Mp0, tk)
    Mp = tk * nk                                      # contraction padded to tile multiple

    # ---- wrapper glue: flatten interior pixels, pad only where needed ----
    x_flat = x[:, 0].astype(compute_dtype).reshape(B, Mdim)
    if Bp != B or Mp != Mdim:
        x_flat = jnp.pad(x_flat, ((0, Bp - B), (0, Mp - Mdim)))
    w_pad = fused_weights.astype(compute_dtype)
    if Mp != Mdim or Np != num_stats:
        w_pad = jnp.pad(w_pad, ((0, Mp - Mdim), (0, Np - num_stats)))

    if nk == 1:
        kernel = _brucenet_kernel_single
        # Grid-invariant weight: DMA'd once, stays resident -> single buffer.
        w_spec = pl.BlockSpec((tk, Np), lambda b, k: (0, 0),
                              pipeline_mode=pl.Buffered(1))
        scratch_shapes = []
    else:
        kernel = _brucenet_kernel_tiled
        # Weight slice changes along k -> keep default double-buffering to hide DMA.
        w_spec = pl.BlockSpec((tk, Np), lambda b, k: (k, 0))
        scratch_shapes = [pltpu.VMEM((bt, Np), jnp.float32)]

    cost = pl.CostEstimate(
        flops=2 * Bp * Mp * Np,
        transcendentals=0,
        bytes_accessed=in_item * (Bp * Mp + Mp * Np) + 4 * Bp * Np)

    out = pl.pallas_call(
        kernel,
        out_shape=jax.ShapeDtypeStruct((Bp, Np), jnp.float32),
        grid=(nblocks, nk),
        in_specs=[
            pl.BlockSpec((bt, tk), lambda b, k: (b, k)),   # image slab (batch on sublanes)
            w_spec,                                        # fused conv+pool weights
        ],
        out_specs=pl.BlockSpec((bt, Np), lambda b, k: (b, 0)),
        scratch_shapes=scratch_shapes,
        compiler_params=pltpu.CompilerParams(
            dimension_semantics=("parallel", "arbitrary"),
            vmem_limit_bytes=int(vmem_budget)),
        cost_estimate=cost,
    )(x_flat, w_pad)

    stats = out[:B, :num_stats]
    if B == 1:
        return stats[0]        # mirrors torch: stacked stats with dim() == 1
    return stats               # mirrors torch.transpose(stack, 1, 0) -> (B, num_stats)


def brucenet_reference(x, filters, p):
    """Plain-JAX reference of the synthesized forward pass."""
    B, _, H, W = x.shape
    K, _, _ = filters.shape
    bands = jax.lax.conv_general_dilated(
        x.astype(jnp.float32), filters[:, None].astype(jnp.float32),
        window_strides=(1, 1), padding="SAME",
        dimension_numbers=("NCHW", "OIHW", "NCHW"))
    nR, nC = H // p, W // p
    pooled = bands.reshape(B, K, nR, p, nC, p).mean(axis=(3, 5))
    stats = pooled.reshape(B, K * nR * nC)
    return stats[0] if B == 1 else stats


if __name__ == "__main__":
    key = jax.random.PRNGKey(0)
    kx, kf = jax.random.split(key)

    # Small shapes consistent with the module's forward (grayscale image input).
    B, H, W = 2, 16, 16
    K, KH, KW = 8, 5, 5          # synthetic "pyramid" filter bank
    pooling_region_size = 8      # uniform pooling regions -> 2x2 per band

    x = jax.random.uniform(kx, (B, 1, H, W), dtype=jnp.float32)
    filters = 0.1 * jax.random.normal(kf, (K, KH, KW), dtype=jnp.float32)

    ref = brucenet_reference(x, filters, pooling_region_size)

    # Build the fused conv+pool weights ONCE (static filter bank) and reuse.
    w_fused = make_brucenet_fused_weights(filters, H, W, pooling_region_size)

    # Default path: whole contraction in one MXU matmul, resident weight.
    out = brucenet_forward(x, filters, pooling_region_size, fused_weights=w_fused)
    out = jax.block_until_ready(out)
    np.testing.assert_allclose(np.asarray(out), np.asarray(ref),
                               rtol=1e-5, atol=1e-5)

    # Also exercise the contraction-tiled accumulator path (used automatically
    # when the dense fused weight would not fit VMEM, e.g. large images).
    out_tiled = brucenet_forward(x, filters, pooling_region_size,
                                 fused_weights=w_fused, k_tile=128)
    out_tiled = jax.block_until_ready(out_tiled)
    np.testing.assert_allclose(np.asarray(out_tiled), np.asarray(ref),
                               rtol=1e-5, atol=1e-5)

    print("KERNEL_OK")
</pallas_src>

<mosaic_0001>
module attributes {stable_mosaic.version = 11 : i64} {
  func.func @_brucenet_kernel_single(%arg0: i32, %arg1: i32, %arg2: memref<8x256xf32, #tpu.memory_space<vmem>>, %arg3: memref<256x128xf32, #tpu.memory_space<vmem>>, %arg4: memref<8x128xf32, #tpu.memory_space<vmem>>) attributes {dimension_semantics = [#tpu.dimension_semantics<parallel>, #tpu.dimension_semantics<arbitrary>], iteration_bounds = array<i64: 1, 1>, scalar_prefetch = 0 : i64, scratch_operands = 0 : i64, tpu.core_type = #tpu.core_type<tc>, window_params = [{transform_indices = @transform_0, window_bounds = array<i64: 8, 256>}, {pipeline_mode = #tpu.pipeline_mode<synchronous>, transform_indices = @transform_1, window_bounds = array<i64: 256, 128>}, {transform_indices = @transform_2, window_bounds = array<i64: 8, 128>}]} {
    %c0 = arith.constant 0 : index
    %c0_0 = arith.constant 0 : index
    %0 = vector.load %arg2[%c0, %c0_0] : memref<8x256xf32, #tpu.memory_space<vmem>>, vector<8x256xf32>
    %c0_1 = arith.constant 0 : index
    %c0_2 = arith.constant 0 : index
    %1 = vector.load %arg3[%c0_1, %c0_2] : memref<256x128xf32, #tpu.memory_space<vmem>>, vector<256x128xf32>
    %cst = arith.constant dense<0.000000e+00> : vector<8x128xf32>
    %2 = tpu.matmul %0, %1, %cst {dimension_numbers = #tpu.dot_dimension_numbers<[1], [0], [0], [1], [0, 0, 1, 1], [], []>} : vector<8x256xf32>, vector<256x128xf32>, vector<8x128xf32> -> vector<8x128xf32>
    %c0_3 = arith.constant 0 : index
    %c0_4 = arith.constant 0 : index
    %3 = vector.load %arg4[%c0_3, %c0_4] : memref<8x128xf32, #tpu.memory_space<vmem>>, vector<8x128xf32>
    tpu.vector_store %arg4[%c0_3, %c0_4], %2 {strides = array<i32>} : memref<8x128xf32, #tpu.memory_space<vmem>>, vector<8x128xf32>,
    return
  }
  func.func @transform_0(%arg0: i32, %arg1: i32) -> (i32, i32) {
    %c0_i32 = arith.constant 0 : i32
    return %arg0, %arg1 : i32, i32
  }
  func.func @transform_1(%arg0: i32, %arg1: i32) -> (i32, i32) {
    %c0_i32 = arith.constant 0 : i32
    %c0_i32_0 = arith.constant 0 : i32
    %c0_i32_1 = arith.constant 0 : i32
    return %c0_i32, %c0_i32_0 : i32, i32
  }
  func.func @transform_2(%arg0: i32, %arg1: i32) -> (i32, i32) {
    %c0_i32 = arith.constant 0 : i32
    %c0_i32_0 = arith.constant 0 : i32
    return %arg0, %c0_i32 : i32, i32
  }
}

</mosaic_0001>

<bundles_post_ra>
// kernel: tpu_custom_call.1
= control target key start
LH: loop header
LB: loop body
LE: loop exit
PB: predicated region body
PF: predicated region fallthrough
CT: control target
= control target key end

     0   :  { %7 = vsyncpa [#allocation3], 0  ;;  %s366_s0 = inlined_call_operand.hbm [shape: f32[8,256], index: 0, kind: input, shape index: {}]   ;;  %s367_s1 = inlined_call_operand.hbm [shape: f32[256,128], index: 1, kind: input, shape index: {}]   ;;  %s368_s2 = inlined_call_operand.hbm [shape: f32[8,128], index: 2, kind: output, shape index: {}]  }
   0x1   :  { %8 = vsyncpa [#allocation6], 0 }
   0x2   :  { %9 = vsyncpa [#allocation4], 0  ;;  %s303_s9 = smov [#allocation2]   ;;  %s304_s11 = smov [#allocation5]  }
   0x3   :  { %s16_s10 = sshll.u32 %s303_s9, 4  ;;  %s25_s12 = sshll.u32 %s304_s11, 4  ;;  %s17_s10 = int_to_ptr.vmem [resolvable:$true] %s16_s10  ;;  %s323_s12 = int_to_ptr.vmem [resolvable:$true] %s25_s12 }
   0x4   :  { %s231_s15 = scalar_lea.hbm %s366_s0, 256 }
   0x5   :  { %p232_p0 = scmp.ne.s32.totalorder %s366_s0, %s231_s15  ;;  %p235_p1 = scmp.lt.u32.totalorder %s231_s15, %s366_s0 }
   0x7   :  { %p237_p2 = pnand %p235_p1, %p232_p0 }
   0x9   :  { %240 = shalt.err (!%p237_p2)
}
   0xa   :  { %s241_s20 = scalar_lea.vmem %s17_s10, 256  ;;  %p246_p4 = scmp.lt.s32.totalorder %s17_s10, %s17_s10 }
   0xb   :  { %p242_p3 = scmp.ne.s32.totalorder %s17_s10, %s241_s20  ;;  %p247_p5 = scmp.lt.s32.totalorder %s241_s20, %s241_s20 }
   0xd   :  { %p248_p6 = por %p247_p5, %p246_p4 }
   0xf   :  { %p249_p7 = pnand %p248_p6, %p242_p3 }
  0x11   :  { %252 = shalt.err (!%p249_p7)
}
  0x12   :  { %19 = dma.hbm_to_vmem [thread:$0]  %s366_s0, 256, %s17_s10, [#allocation3]  }
  0x13   :  { %s253_s25 = scalar_lea.hbm %s367_s1, 4096 }
  0x14   :  { %p254_p8 = scmp.ne.s32.totalorder %s367_s1, %s253_s25  ;;  %p257_p9 = scmp.lt.u32.totalorder %s253_s25, %s367_s1 }
  0x16   :  { %p259_p10 = pnand %p257_p9, %p254_p8 }
  0x18   :  { %262 = shalt.err (!%p259_p10)
}
  0x19   :  { %s263_s30 = scalar_lea.vmem %s323_s12, 4096  ;;  %p268_p12 = scmp.lt.s32.totalorder %s323_s12, %s323_s12 }
  0x1a   :  { %p264_p11 = scmp.ne.s32.totalorder %s323_s12, %s263_s30  ;;  %p269_p13 = scmp.lt.s32.totalorder %s263_s30, %s263_s30 }
  0x1c   :  { %p270_p0 = por %p269_p13, %p268_p12 }
  0x1e   :  { %p271_p1 = pnand %p270_p0, %p264_p11 }
  0x20   :  { %274 = shalt.err (!%p271_p1)
}
  0x21   :  { %s305_s0 = smov 128   ;;  %s306_s3 = smov 8  }
  0x22   :  { %31 = dma.hbm_to_vmem [thread:$0]  %s367_s1, 4096, %s323_s12, [#allocation6], %s305_s0, %s305_s0, %s306_s3  }
  0x23   :  { %297 = dma.done.wait [#allocation3], 256  }
  0x24   :  { %298 = vsyncadd [#allocation3], 4294967040 }
  0x25   :  { %299 = dma.done.wait [#allocation6], 4096  }
  0x26   :  { %300 = vsyncadd [#allocation6], 4294963200  ;;  %v56_v0 = vld [vmem:[#allocation5 + $0x80] sm:$0xff]  ;;  %v57_v1 = vld [vmem:[#allocation5 + $0x88] sm:$0xff]  ;;  %s307_s1 = smov [#allocation7]  }
  0x27   :  { %v40_v2 = vld [vmem:[#allocation5] sm:$0xff]  ;;  %v194_v3 = vpack.c.bf16 %v57_v1, %v56_v0  ;;  %v41_v4 = vld [vmem:[#allocation5 + $0x8] sm:$0xff]  ;;  %v58_v5 = vld [vmem:[#allocation5 + $0x90] sm:$0xff]  ;;  %s149_s6 = sshll.u32 %s307_s1, 4  ;;  %s150_s6 = int_to_ptr.vmem [resolvable:$true] %s149_s6 }
  0x28   :  { %v59_v6 = vld [vmem:[#allocation5 + $0x98] sm:$0xff]  ;;  %v196_v7 = vpack.c.bf16 %v41_v4, %v40_v2  ;;  %v42_v9 = vld [vmem:[#allocation5 + $0x10] sm:$0xff]  ;;  %v60_v11 = vld [vmem:[#allocation5 + $0xa0] sm:$0xff]  ;;  %s275_s7 = scalar_lea.vmem %s150_s6, 128  ;;  %p280_p3 = scmp.lt.s32.totalorder %s150_s6, %s150_s6 }
  0x29   :  { %v198_v8 = vpack.c.bf16 %v59_v6, %v58_v5  ;;  %v43_v10 = vld [vmem:[#allocation5 + $0x18] sm:$0xff]  ;;  %195 = vmatprep.subr.bf16.mxu0 %v194_v3  ;;  %v61_v12 = vld [vmem:[#allocation5 + $0xa8] sm:$0xff]  ;;  %v44_v15 = vld [vmem:[#allocation5 + $0x20] sm:$0xff]  ;;  %p276_p2 = scmp.ne.s32.totalorder %s150_s6, %s275_s7  ;;  %p281_p4 = scmp.lt.s32.totalorder %s275_s7, %s275_s7 }
  0x2a   :  { %197 = vmatpush3.bf16.msra.mxu0 %v196_v7  ;;  %v200_v13 = vpack.c.bf16 %v43_v10, %v42_v9  ;;  %v202_v14 = vpack.c.bf16 %v61_v12, %v60_v11  ;;  %v45_v16 = vld [vmem:[#allocation5 + $0x28] sm:$0xff]  ;;  %v62_v17 = vld [vmem:[#allocation5 + $0xb0] sm:$0xff]  ;;  %v63_v18 = vld [vmem:[#allocation5 + $0xb8] sm:$0xff] }
  0x2b   :  { %199 = vmatprep.subr.bf16.mxu0 %v198_v8  ;;  %v204_v19 = vpack.c.bf16 %v45_v16, %v44_v15  ;;  %v206_v20 = vpack.c.bf16 %v63_v18, %v62_v17  ;;  %v46_v21 = vld [vmem:[#allocation5 + $0x30] sm:$0xff]  ;;  %v47_v22 = vld [vmem:[#allocation5 + $0x38] sm:$0xff]  ;;  %v64_v23 = vld [vmem:[#allocation5 + $0xc0] sm:$0xff]  ;;  %p282_p5 = por %p281_p4, %p280_p3 }
  0x2c   :  { %v65_v24 = vld [vmem:[#allocation5 + $0xc8] sm:$0xff]  ;;  %v39_v25 = vld [vmem:[#allocation2 + $0x8] sm:$0xff]  ;;  %v208_v26 = vpack.c.bf16 %v47_v22, %v46_v21  ;;  %v48_v28 = vld [vmem:[#allocation5 + $0x40] sm:$0xff] }
  0x2d   :  { %136 = vmatprep.mubr.f32.mxu0 %v39_v25  ;;  %v210_v27 = vpack.c.bf16 %v65_v24, %v64_v23  ;;  %v49_v29 = vld [vmem:[#allocation5 + $0x48] sm:$0xff]  ;;  %v66_v30 = vld [vmem:[#allocation5 + $0xd0] sm:$0xff]  ;;  %v67_v31 = vld [vmem:[#allocation5 + $0xd8] sm:$0xff]  ;;  %p283_p6 = pnand %p282_p5, %p276_p2 }
  0x2e   :  { %201 = vmatpush3.bf16.msra.mxu0 %v200_v13  ;;  %v212_v32 = vpack.c.bf16 %v49_v29, %v48_v28  ;;  %v214_v33 = vpack.c.bf16 %v67_v31, %v66_v30  ;;  %v50_v34 = vld [vmem:[#allocation5 + $0x50] sm:$0xff]  ;;  %v51_v35 = vld [vmem:[#allocation5 + $0x58] sm:$0xff]  ;;  %v68_v36 = vld [vmem:[#allocation5 + $0xe0] sm:$0xff] }
  0x2f   :  { %203 = vmatprep.subr.bf16.mxu0 %v202_v14  ;;  %v69_v37 = vld [vmem:[#allocation5 + $0xe8] sm:$0xff]  ;;  %v216_v38 = vpack.c.bf16 %v51_v35, %v50_v34  ;;  %v52_v40 = vld [vmem:[#allocation5 + $0x60] sm:$0xff]  ;;  %v70_v42 = vld [vmem:[#allocation5 + $0xf0] sm:$0xff] }
  0x30   :  { %v218_v39 = vpack.c.bf16 %v69_v37, %v68_v36  ;;  %v53_v41 = vld [vmem:[#allocation5 + $0x68] sm:$0xff]  ;;  %v71_v43 = vld [vmem:[#allocation5 + $0xf8] sm:$0xff]  ;;  %v54_v46 = vld [vmem:[#allocation5 + $0x70] sm:$0xff] }
  0x31   :  { %v220_v44 = vpack.c.bf16 %v53_v41, %v52_v40  ;;  %v222_v45 = vpack.c.bf16 %v71_v43, %v70_v42  ;;  %v55_v47 = vld [vmem:[#allocation5 + $0x78] sm:$0xff]  ;;  %v38_v49 = vld [vmem:[#allocation2] sm:$0xff] }
  0x32   :  { %205 = vmatpush3.bf16.msra.mxu0 %v204_v19  ;;  %v224_v48 = vpack.c.bf16 %v55_v47, %v54_v46 }
  0x33   :  { %207 = vmatprep.subr.bf16.mxu0 %v206_v20 }
  0x36   :  { %209 = vmatpush3.bf16.msra.mxu0 %v208_v26 }
  0x37   :  { %211 = vmatprep.subr.bf16.mxu0 %v210_v27 }
  0x3a   :  { %213 = vmatpush3.bf16.msra.mxu0 %v212_v32 }
  0x3b   :  { %215 = vmatprep.subr.bf16.mxu0 %v214_v33 }
  0x3e   :  { %217 = vmatpush3.bf16.msra.mxu0 %v216_v38 }
  0x3f   :  { %219 = vmatprep.subr.bf16.mxu0 %v218_v39 }
  0x42   :  { %221 = vmatpush3.bf16.msra.mxu0 %v220_v44 }
  0x43   :  { %223 = vmatprep.subr.bf16.mxu0 %v222_v45 }
  0x46   :  { %225 = vmatpush3.bf16.msra.mxu0 %v224_v48 }
  0x49   :  { %137 = vmatmul.mubr.f32.vlgmr.msra.gmra.mrb[0].mxu0 %v38_v49 }
 0x11c   :  { %v191_v50 = vpop.f32.mrb[0].mxu0 }
 0x11d   :  { %v192_v51 = vpop.f32.mrb[1].mxu0 }
 0x11e   :  { %v193_v52 = vadd.f32 %v192_v51, %v191_v50 }
 0x120   :  { %142 = vst [vmem:[#allocation7] sm:$0xff] %v193_v52 }
 0x121   :  { %286 = shalt.err (!%p283_p6)
}
 0x122   :  { %s287_s10 = scalar_lea.hbm %s368_s2, 128 }
 0x123   :  { %p288_p7 = scmp.ne.s32.totalorder %s368_s2, %s287_s10  ;;  %p291_p8 = scmp.lt.u32.totalorder %s287_s10, %s368_s2 }
 0x125   :  { %p293_p9 = pnand %p291_p8, %p288_p7 }
 0x127   :  { %296 = shalt.err (!%p293_p9)
}
 0x128   :  { %152 = dma.vmem_to_hbm [thread:$0]  %s150_s6, 128, %s368_s2, [#allocation4]  }
 0x129   :  { %301 = dma.done.wait [#allocation4], 128  }
 0x12a   :  { %302 = vsyncadd [#allocation4], 4294967168 }
 0x12b   :  { %156 = vsyncpa [#allocation3], 1 }
 0x12c   :  { %157 = vsyncpa [#allocation6], 1 }
 0x12d   :  { %158 = vsyncpa [#allocation4], 1 }

</bundles_post_ra>
